<compile_context>
chip_gen: v7x
topology: tpu7x:2x2x1
jax: 0.10.0
libtpu: 0.0.40
codegen_flags: <defaults>
</compile_context>

<pallas_src>
import functools

import numpy as np
import jax
import jax.numpy as jnp
from jax import lax
from jax.experimental import pallas as pl
from jax.experimental.pallas import tpu as pltpu


def _round_up(x, m):
    return ((x + m - 1) // m) * m


def _encoder_video_kernel(x_ref, wt_ref, b_ref, o_ref, *, apply_l2norm):
    # x_ref:  (tb, D)      batch tile of input features (native dtype)
    # wt_ref: (D, E_pad)   pre-transposed linear weight (native dtype)
    # b_ref:  (1, E_pad)   bias (f32)
    # o_ref:  (tb, E_pad)  output tile
    feats = jnp.dot(x_ref[...], wt_ref[...],
                    preferred_element_type=jnp.float32) + b_ref[...]

    if apply_l2norm:
        # l2norm over the embed axis.  Padded embed columns are exactly zero
        # (zero weight columns + zero bias), so they do not affect the sum.
        inv_norm = lax.rsqrt(jnp.sum(feats * feats, axis=1, keepdims=True))
        feats = feats * inv_norm

    o_ref[...] = feats.astype(o_ref.dtype)


def encoder_video_forward(images, weight, bias, *, no_imgnorm=False, tb=128):
    """images: (B, feature_dim); weight: (embed_size, feature_dim) (PyTorch
    layout); bias: (embed_size,).  Returns (B, embed_size)."""
    B, D = images.shape
    E, Dw = weight.shape
    assert Dw == D

    # Sublane packing for the input dtype (f32 -> 8, bf16 -> 16, int8 -> 32).
    pack = {4: 8, 2: 16, 1: 32}[jnp.dtype(images.dtype).itemsize]

    # Clamp the batch tile for tiny batches, keep it sublane-aligned.
    tb = max(pack, min(tb, _round_up(B, pack)))
    tb = _round_up(tb, pack)

    B_pad = _round_up(B, tb)      # pad batch to a whole number of tiles
    E_pad = _round_up(E, 128)     # lane-dense output (no masked stores)

    x = images
    if B_pad != B:
        x = jnp.pad(x, ((0, B_pad - B), (0, 0)))

    # Pre-transpose weight once in the wrapper: (E, D) -> (D, E_pad).
    w_t = jnp.transpose(weight)                       # (D, E)
    if E_pad != E:
        w_t = jnp.pad(w_t, ((0, 0), (0, E_pad - E)))  # zero columns
        b = jnp.pad(bias, (0, E_pad - E))
    else:
        b = bias
    b2d = b.reshape(1, E_pad).astype(jnp.float32)

    # TODO(synk): for very large E*D weights (v7x 64 MiB VMEM), tile the K
    # (feature) axis with a (tb, E_pad) f32 accumulator instead of keeping
    # the full weight resident.  Not needed at these shapes.
    kernel = functools.partial(_encoder_video_kernel,
                               apply_l2norm=not no_imgnorm)

    out = pl.pallas_call(
        kernel,
        out_shape=jax.ShapeDtypeStruct((B_pad, E_pad), images.dtype),
        grid_spec=pltpu.PrefetchScalarGridSpec(
            num_scalar_prefetch=0,
            grid=(B_pad // tb,),
            in_specs=[
                pl.BlockSpec((tb, D), lambda i: (i, 0)),       # batch tile
                pl.BlockSpec((D, E_pad), lambda i: (0, 0)),    # resident W^T
                pl.BlockSpec((1, E_pad), lambda i: (0, 0)),    # bias
            ],
            out_specs=pl.BlockSpec((tb, E_pad), lambda i: (i, 0)),
        ),
        compiler_params=pltpu.CompilerParams(
            dimension_semantics=("parallel",)),
    )(x, w_t, b2d)

    return out[:B, :E]


def _reference(images, weight, bias, no_imgnorm=False):
    feats = images @ weight.T + bias
    if no_imgnorm:
        return feats
    norm = np.sqrt((feats ** 2).sum(axis=1, keepdims=True))
    return feats / norm


if __name__ == "__main__":
    # Small shapes consistent with the module: batch=8, feature_dim=64, embed_size=32
    batch, feature_dim, embed_size = 8, 64, 32

    key = jax.random.PRNGKey(0)
    k_img, k_w = jax.random.split(key)

    images = jax.random.normal(k_img, (batch, feature_dim), dtype=jnp.float32)

    # Xavier-uniform init exactly as EncoderVideo.init_weights
    r = np.sqrt(6.0) / np.sqrt(feature_dim + embed_size)
    weight = jax.random.uniform(k_w, (embed_size, feature_dim),
                                dtype=jnp.float32, minval=-r, maxval=r)
    bias = jnp.zeros((embed_size,), dtype=jnp.float32)

    out = encoder_video_forward(images, weight, bias)
    out = jax.block_until_ready(out)

    ref = _reference(np.asarray(images), np.asarray(weight), np.asarray(bias))
    np.testing.assert_allclose(np.asarray(out), ref, rtol=1e-5, atol=1e-5)

    # Also exercise the no_imgnorm path (shares the same kernel body).
    out2 = jax.block_until_ready(
        encoder_video_forward(images, weight, bias, no_imgnorm=True))
    ref2 = _reference(np.asarray(images), np.asarray(weight), np.asarray(bias),
                      no_imgnorm=True)
    np.testing.assert_allclose(np.asarray(out2), ref2, rtol=1e-5, atol=1e-5)

    print("KERNEL_OK")
</pallas_src>

<mosaic_0001>
module attributes {stable_mosaic.version = 11 : i64} {
  func.func @_encoder_video_kernel(%arg0: i32, %arg1: memref<8x64xf32, #tpu.memory_space<vmem>>, %arg2: memref<64x128xf32, #tpu.memory_space<vmem>>, %arg3: memref<1x128xf32, #tpu.memory_space<vmem>>, %arg4: memref<8x128xf32, #tpu.memory_space<vmem>>) attributes {dimension_semantics = [#tpu.dimension_semantics<parallel>], iteration_bounds = array<i64: 1>, scalar_prefetch = 0 : i64, scratch_operands = 0 : i64, tpu.core_type = #tpu.core_type<tc>, window_params = [{transform_indices = @transform_0, window_bounds = array<i64: 8, 64>}, {pipeline_mode = #tpu.pipeline_mode<synchronous>, transform_indices = @transform_1, window_bounds = array<i64: 64, 128>}, {pipeline_mode = #tpu.pipeline_mode<synchronous>, transform_indices = @transform_2, window_bounds = array<i64: 1, 128>}, {transform_indices = @transform_3, window_bounds = array<i64: 8, 128>}]} {
    %c0 = arith.constant 0 : index
    %c0_0 = arith.constant 0 : index
    %0 = vector.load %arg1[%c0, %c0_0] : memref<8x64xf32, #tpu.memory_space<vmem>>, vector<8x64xf32>
    %c0_1 = arith.constant 0 : index
    %c0_2 = arith.constant 0 : index
    %1 = vector.load %arg2[%c0_1, %c0_2] : memref<64x128xf32, #tpu.memory_space<vmem>>, vector<64x128xf32>
    %cst = arith.constant dense<0.000000e+00> : vector<8x128xf32>
    %2 = tpu.matmul %0, %1, %cst {dimension_numbers = #tpu.dot_dimension_numbers<[1], [0], [0], [1], [0, 0, 1, 1], [], []>} : vector<8x64xf32>, vector<64x128xf32>, vector<8x128xf32> -> vector<8x128xf32>
    %c0_3 = arith.constant 0 : index
    %c0_4 = arith.constant 0 : index
    %3 = vector.load %arg3[%c0_3, %c0_4] : memref<1x128xf32, #tpu.memory_space<vmem>>, vector<1x128xf32>
    %4 = vector.broadcast %3 : vector<1x128xf32> to vector<8x128xf32>
    %5 = arith.addf %2, %4 : vector<8x128xf32>
    %6 = arith.mulf %5, %5 : vector<8x128xf32>
    %cst_5 = arith.constant dense<0.000000e+00> : vector<8xf32>
    %7 = vector.multi_reduction <add>, %6, %cst_5 [1] : vector<8x128xf32> to vector<8xf32>
    %8 = vector.shape_cast %7 : vector<8xf32> to vector<8x1xf32>
    %9 = math.rsqrt %8 : vector<8x1xf32>
    %10 = vector.broadcast %9 : vector<8x1xf32> to vector<8x128xf32>
    %11 = arith.mulf %5, %10 : vector<8x128xf32>
    %c0_6 = arith.constant 0 : index
    %c0_7 = arith.constant 0 : index
    %12 = vector.load %arg4[%c0_6, %c0_7] : memref<8x128xf32, #tpu.memory_space<vmem>>, vector<8x128xf32>
    tpu.vector_store %arg4[%c0_6, %c0_7], %11 {strides = array<i32>} : memref<8x128xf32, #tpu.memory_space<vmem>>, vector<8x128xf32>,
    return
  }
  func.func @transform_0(%arg0: i32) -> (i32, i32) {
    %c0_i32 = arith.constant 0 : i32
    %c0_i32_0 = arith.constant 0 : i32
    return %arg0, %c0_i32 : i32, i32
  }
  func.func @transform_1(%arg0: i32) -> (i32, i32) {
    %c0_i32 = arith.constant 0 : i32
    %c0_i32_0 = arith.constant 0 : i32
    %c0_i32_1 = arith.constant 0 : i32
    return %c0_i32, %c0_i32_0 : i32, i32
  }
  func.func @transform_2(%arg0: i32) -> (i32, i32) {
    %c0_i32 = arith.constant 0 : i32
    %c0_i32_0 = arith.constant 0 : i32
    %c0_i32_1 = arith.constant 0 : i32
    return %c0_i32, %c0_i32_0 : i32, i32
  }
  func.func @transform_3(%arg0: i32) -> (i32, i32) {
    %c0_i32 = arith.constant 0 : i32
    %c0_i32_0 = arith.constant 0 : i32
    return %arg0, %c0_i32 : i32, i32
  }
}

</mosaic_0001>

<bundles_post_ra>
// kernel: tpu_custom_call.1
= control target key start
LH: loop header
LB: loop body
LE: loop exit
PB: predicated region body
PF: predicated region fallthrough
CT: control target
= control target key end

     0   :  { %8 = vsyncpa [#allocation3], 0  ;;  %s351_s0 = inlined_call_operand.hbm [shape: f32[8,64], index: 0, kind: input, shape index: {}]   ;;  %s352_s1 = inlined_call_operand.hbm [shape: f32[64,128], index: 1, kind: input, shape index: {}]   ;;  %s353_s2 = inlined_call_operand.vmem [shape: f32[1,128], index: 2, kind: input, shape index: {}]   ;;  %s354_s3 = inlined_call_operand.hbm [shape: f32[8,128], index: 3, kind: output, shape index: {}]  }
   0x1   :  { %9 = vsyncpa [#allocation6], 0 }
   0x2   :  { %10 = vsyncpa [#allocation4], 0  ;;  %s277_s12 = smov [#allocation2]   ;;  %s278_s14 = smov [#allocation5]  }
   0x3   :  { %s17_s13 = sshll.u32 %s277_s12, 4  ;;  %s26_s15 = sshll.u32 %s278_s14, 4  ;;  %s18_s13 = int_to_ptr.vmem [resolvable:$true] %s17_s13  ;;  %s305_s15 = int_to_ptr.vmem [resolvable:$true] %s26_s15 }
   0x4   :  { %s205_s18 = scalar_lea.hbm %s351_s0, 128 }
   0x5   :  { %p206_p0 = scmp.ne.s32.totalorder %s351_s0, %s205_s18  ;;  %p209_p1 = scmp.lt.u32.totalorder %s205_s18, %s351_s0 }
   0x7   :  { %p211_p2 = pnand %p209_p1, %p206_p0 }
   0x9   :  { %214 = shalt.err (!%p211_p2)
}
   0xa   :  { %s215_s23 = scalar_lea.vmem %s18_s13, 128  ;;  %p220_p4 = scmp.lt.s32.totalorder %s18_s13, %s18_s13 }
   0xb   :  { %p216_p3 = scmp.ne.s32.totalorder %s18_s13, %s215_s23  ;;  %p221_p5 = scmp.lt.s32.totalorder %s215_s23, %s215_s23 }
   0xd   :  { %p222_p6 = por %p221_p5, %p220_p4 }
   0xf   :  { %p223_p7 = pnand %p222_p6, %p216_p3 }
  0x11   :  { %226 = shalt.err (!%p223_p7)
}
  0x12   :  { %20 = dma.hbm_to_vmem [thread:$0]  %s351_s0, 128, %s18_s13, [#allocation3]  }
  0x13   :  { %s227_s28 = scalar_lea.hbm %s352_s1, 1024 }
  0x14   :  { %p228_p8 = scmp.ne.s32.totalorder %s352_s1, %s227_s28  ;;  %p231_p9 = scmp.lt.u32.totalorder %s227_s28, %s352_s1 }
  0x16   :  { %p233_p10 = pnand %p231_p9, %p228_p8 }
  0x18   :  { %236 = shalt.err (!%p233_p10)
}
  0x19   :  { %s237_s6 = scalar_lea.vmem %s305_s15, 1024  ;;  %p242_p12 = scmp.lt.s32.totalorder %s305_s15, %s305_s15 }
  0x1a   :  { %p238_p11 = scmp.ne.s32.totalorder %s305_s15, %s237_s6  ;;  %p243_p13 = scmp.lt.s32.totalorder %s237_s6, %s237_s6 }
  0x1c   :  { %p244_p0 = por %p243_p13, %p242_p12 }
  0x1e   :  { %p245_p1 = pnand %p244_p0, %p238_p11 }
  0x20   :  { %248 = shalt.err (!%p245_p1)
}
  0x21   :  { %s279_s0 = smov 128   ;;  %s280_s7 = smov 8  }
  0x22   :  { %32 = dma.hbm_to_vmem [thread:$0]  %s352_s1, 1024, %s305_s15, [#allocation6], %s279_s0, %s279_s0, %s280_s7  }
  0x23   :  { %271 = dma.done.wait [#allocation3], 128  }
  0x24   :  { %272 = vsyncadd [#allocation3], 4294967168 }
  0x25   :  { %273 = dma.done.wait [#allocation6], 1024  }
  0x26   :  { %274 = vsyncadd [#allocation6], 4294966272  ;;  %v281_v0 = vmov 0.0|0.0   ;;  %vm282_vm0 = vmmov 0   ;;  %v283_v1 = vmov 0.0   ;;  %v42_v2 = vld [vmem:[#allocation5] sm:$0xff] }
  0x27   :  { %183 = vmatprep.subr.bf16.mxu0 %v281_v0  ;;  %180 = vmatprep.mubr.msk.f32.mxu0 %vm282_vm0, %v283_v1  ;;  %v43_v3 = vld [vmem:[#allocation5 + $0x8] sm:$0xff]  ;;  %v44_v4 = vld [vmem:[#allocation5 + $0x10] sm:$0xff]  ;;  %v45_v6 = vld [vmem:[#allocation5 + $0x18] sm:$0xff]  ;;  %vm57_vm1 = vcmask 523264   ;;  %s284_s11 = smov [#allocation7]  }
  0x28   :  { %v184_v5 = vpack.c.bf16 %v43_v3, %v42_v2  ;;  %v187_v7 = vpack.c.bf16 %v45_v6, %v44_v4  ;;  %v46_v8 = vld [vmem:[#allocation5 + $0x20] sm:$0xff]  ;;  %v47_v9 = vld [vmem:[#allocation5 + $0x28] sm:$0xff]  ;;  %v48_v11 = vld [vmem:[#allocation5 + $0x30] sm:$0xff]  ;;  %s143_s12 = sshll.u32 %s284_s11, 4  ;;  %s144_s12 = int_to_ptr.vmem [resolvable:$true] %s143_s12 }
  0x29   :  { %v190_v10 = vpack.c.bf16 %v47_v9, %v46_v8  ;;  %v49_v12 = vld [vmem:[#allocation5 + $0x38] sm:$0xff]  ;;  %s249_s13 = scalar_lea.vmem %s144_s12, 128  ;;  %p254_p3 = scmp.lt.s32.totalorder %s144_s12, %s144_s12 }
  0x2a   :  { %185 = vmatpush3.bf16.msra.mxu0 %v184_v5  ;;  %v193_v13 = vpack.c.bf16 %v49_v12, %v48_v11  ;;  %v41_v14 = vld [vmem:[#allocation2] sm:$0xff]  ;;  %p250_p2 = scmp.ne.s32.totalorder %s144_s12, %s249_s13  ;;  %p255_p4 = scmp.lt.s32.totalorder %s249_s13, %s249_s13 }
  0x2b   :  { %186 = vmatprep.subr.bf16.mxu0 %v281_v0  ;;  %v153_v15 = vld [vmem:[%s353_s2] ss:$0 sm:$0xff] }
  0x2c   :  { %p256_p5 = por %p255_p4, %p254_p3 }
  0x2e   :  { %188 = vmatpush3.bf16.msra.mxu0 %v187_v7  ;;  %p257_p6 = pnand %p256_p5, %p250_p2 }
  0x2f   :  { %189 = vmatprep.subr.bf16.mxu0 %v281_v0 }
  0x32   :  { %191 = vmatpush3.bf16.msra.mxu0 %v190_v10 }
  0x33   :  { %192 = vmatprep.subr.bf16.mxu0 %v281_v0 }
  0x36   :  { %194 = vmatpush3.bf16.msra.mxu0 %v193_v13 }
  0x39   :  { %181 = vmatmul.mubr.msk.f32.vlgmr.msra.gmra.mrb[0].mxu0 %vm57_vm1, %v41_v14 }
 0x10c   :  { %v127_v16 = vpop.f32.mrb[0].mxu0 }
 0x10d   :  { %v128_v17 = vadd.f32 %v153_v15, %v127_v16  ;;  %v182_v18 = vpop.f32.mrb[1].mxu0 }
 0x10f   :  { %v131_v19 = vmul.f32 %v128_v17, %v128_v17 }
 0x111   :  { %132 = vadd.xlane.f32.xlu0 %v131_v19 }
 0x19e   :  { %v133_v20 = vpop.xlane.xlu0 %132 }
 0x19f   :  { %203 = vrsqrt.f32 %v133_v20 }
 0x1a9   :  { %v204_v21 = vpop.eup %203 }
 0x1aa   :  { %v135_v22 = vmul.f32 %v204_v21, %v128_v17 }
 0x1ac   :  { %136 = vst [vmem:[#allocation7] sm:$0xff] %v135_v22 }
 0x1ad   :  { %260 = shalt.err (!%p257_p6)
}
 0x1ae   :  { %s261_s15 = scalar_lea.hbm %s354_s3, 128 }
 0x1af   :  { %p262_p7 = scmp.ne.s32.totalorder %s354_s3, %s261_s15  ;;  %p265_p8 = scmp.lt.u32.totalorder %s261_s15, %s354_s3 }
 0x1b1   :  { %p267_p9 = pnand %p265_p8, %p262_p7 }
 0x1b3   :  { %270 = shalt.err (!%p267_p9)
}
 0x1b4   :  { %146 = dma.vmem_to_hbm [thread:$0]  %s144_s12, 128, %s354_s3, [#allocation4]  }
 0x1b5   :  { %275 = dma.done.wait [#allocation4], 128  }
 0x1b6   :  { %276 = vsyncadd [#allocation4], 4294967168 }
 0x1b7   :  { %150 = vsyncpa [#allocation3], 1 }
 0x1b8   :  { %151 = vsyncpa [#allocation6], 1 }
 0x1b9   :  { %152 = vsyncpa [#allocation4], 1 }

</bundles_post_ra>
